<compile_context>
chip_gen: v6e
topology: v6e:2x2x1
jax: 0.10.0
libtpu: 0.0.40
codegen_flags: <defaults>
</compile_context>

<pallas_src>
import functools

import jax
import jax.numpy as jnp
from jax.experimental import pallas as pl
from jax.experimental.pallas import tpu as pltpu

_LANE = 128


def _fake_quant_kernel(s_ref, x_ref, o_ref):
    """Uniform affine fake-quantization on one (tm, 128) tile.

    s_ref: SMEM (3,) float32 scalars = [delta, lo, hi] with
           lo = -zero_point, hi = (n_levels - 1) - zero_point.
    Folded form  clip(round(x / delta), lo, hi) * delta  is bit-identical to
    the PyTorch  (clip(round(x / delta) + zp, 0, qmax) - zp) * delta  for
    (integer-valued) zero points.
    """
    delta = s_ref[0]
    lo = s_ref[1]
    hi = s_ref[2]
    x = x_ref[...].astype(jnp.float32)
    # True divide (EUP slot) for bit parity with torch.round(x / delta);
    # fully hidden under the HBM roofline of this streaming kernel.
    q = jnp.clip(jnp.round(x / delta), lo, hi)
    o_ref[...] = (q * delta).astype(o_ref.dtype)


def _quantize_2d(x2, scalars, *, tile_rows, donate):
    """Run the fake-quant kernel over a lane-dense (rows, 128) slab."""
    rows, lane = x2.shape
    # Biggest block that fits: full array if small, else tile_rows (mult of 8).
    tm = rows if rows <= tile_rows else tile_rows
    grid = (pl.cdiv(rows, tm),)

    itemsize = x2.dtype.itemsize
    block_bytes = tm * lane * itemsize
    total_bytes = rows * lane * itemsize
    # in + out, double-buffered, plus a little headroom for internal scratch.
    vmem_limit = min(32 << 20, max(16 << 20, 4 * block_bytes + (4 << 20)))

    cost = pl.CostEstimate(
        flops=5 * rows * lane,              # round, 2x clamp, mul, sub-ish
        transcendentals=rows * lane,        # the divide (EUP)
        bytes_accessed=2 * total_bytes,     # read x, write out
    )

    return pl.pallas_call(
        _fake_quant_kernel,
        out_shape=jax.ShapeDtypeStruct((rows, lane), x2.dtype),
        grid_spec=pltpu.PrefetchScalarGridSpec(
            num_scalar_prefetch=1,          # scalars -> SMEM, passed to index maps
            grid=grid,
            in_specs=[pl.BlockSpec((tm, lane), lambda i, s: (i, 0))],
            out_specs=pl.BlockSpec((tm, lane), lambda i, s: (i, 0)),
        ),
        compiler_params=pltpu.CompilerParams(
            dimension_semantics=("parallel",),   # shards the row loop across TCs on v7x
            vmem_limit_bytes=vmem_limit,
        ),
        cost_estimate=cost,
        # Input index 1 = x2 (index 0 is the scalar-prefetch array).
        input_output_aliases=({1: 0} if donate else {}),
    )(scalars, x2)


@functools.partial(jax.jit, static_argnames=("n_bits", "tile_rows", "donate"))
def uniform_affine_quantize(x, delta=1.0, zero_point=0.0, n_bits=8,
                            tile_rows=4096, donate=False):
    """JAX wrapper reproducing UniformAffineQuantizer.forward (eval path).

    x: any-shape float array (e.g. NCHW activations), any float dtype.
    delta, zero_point: scalars (Python or traced device scalars) — traced
    operands, so changing them does NOT trigger a recompile.
    """
    assert 2 <= n_bits <= 8, "bitwidth not supported"
    n_levels = 2 ** n_bits
    qmax = float(n_levels - 1)

    delta_f = jnp.asarray(delta, jnp.float32)
    zp_f = jnp.asarray(zero_point, jnp.float32)
    lo = -zp_f
    hi = qmax - zp_f
    scalars = jnp.stack([delta_f, lo, hi])

    orig_shape = x.shape
    dtype = x.dtype
    total = x.size
    tile_rows = max(8, (int(tile_rows) // 8) * 8)

    if total == 0:
        return x

    flat = x.reshape(-1)
    aligned = (total // _LANE) * _LANE
    rem = total - aligned

    parts = []
    if aligned:
        # Lane-dense 2D view of the flattened tensor; for the common case
        # (total % 128 == 0) this is a free reshape, no copy at all.
        x2 = flat[:aligned].reshape(aligned // _LANE, _LANE)
        out2 = _quantize_2d(x2, scalars, tile_rows=tile_rows, donate=donate)
        parts.append(out2.reshape(-1))
    if rem:
        # <128-element tail: quantize with plain jnp (same folded formula).
        # TODO(synk): a fully zero-copy ragged path would need a manual-DMA
        # (memory_space=pl.ANY) kernel over the flat HBM buffer; the slice +
        # concatenate here still cost ~one extra pass on ragged shapes.
        tail = flat[aligned:].astype(jnp.float32)
        tail_q = (jnp.clip(jnp.round(tail / delta_f), lo, hi) * delta_f)
        parts.append(tail_q.astype(dtype))

    out = parts[0] if len(parts) == 1 else jnp.concatenate(parts)
    return out.reshape(orig_shape)


def _reference(x, delta, zero_point, n_bits):
    """Pure-JAX transcription of the PyTorch forward (unfolded form)."""
    n_levels = 2 ** n_bits
    x_int = jnp.round(x / delta) + zero_point
    x_quant = jnp.clip(x_int, 0.0, n_levels - 1)
    return (x_quant - zero_point) * delta


def _check(name, y, r):
    diff = jnp.abs(y.astype(jnp.float32) - r.astype(jnp.float32))
    assert bool(jnp.all(diff <= 1e-5)), f"mismatch ({name}): max diff {float(diff.max())}"


# TODO(synk): the MSE-search calibration path (init_quantization_scale /
# perform_1D/2D_search, inited=False), channel-wise scales, fast_mode, and the
# QDrop stochastic mixing (is_training and prob < 1) are not exercised by the
# default forward and are left out of the kernel.

if __name__ == "__main__":
    key = jax.random.PRNGKey(0)
    # NCHW activations, consistent with a conv quantizer input.
    x = jax.random.normal(key, (2, 4, 16, 16), dtype=jnp.float32)

    # Case 1: module defaults after __init__ (delta=1.0, zero_point=0.0, 8-bit).
    y0 = uniform_affine_quantize(x, delta=1.0, zero_point=0.0, n_bits=8)
    jax.block_until_ready(y0)
    _check("default", y0, _reference(x, 1.0, 0.0, 8))

    # Case 2: a calibrated scale/zero-point on the SAME shape — exercises the
    # clamp and (being traced scalars) reuses the already-compiled kernel.
    y1 = uniform_affine_quantize(x, delta=0.02, zero_point=128.0, n_bits=8)
    jax.block_until_ready(y1)
    _check("calibrated", y1, _reference(x, 0.02, 128.0, 8))

    # Case 3: ragged element count (not a multiple of 128) -> aligned prefix
    # goes through the kernel, <128-element tail through jnp.
    x3 = jax.random.normal(jax.random.PRNGKey(1), (3, 5, 7, 3), dtype=jnp.float32)
    y3 = uniform_affine_quantize(x3, delta=0.05, zero_point=32.0, n_bits=6)
    jax.block_until_ready(y3)
    _check("ragged", y3, _reference(x3, 0.05, 32.0, 6))

    # Case 4: force a multi-step grid with a partial final block
    # (18 rows, tile_rows=8 -> grid of 3, last block 2 rows).
    x4 = jax.random.normal(jax.random.PRNGKey(2), (2, 4, 16, 18), dtype=jnp.float32)
    y4 = uniform_affine_quantize(x4, delta=0.1, zero_point=64.0, n_bits=8,
                                 tile_rows=8)
    jax.block_until_ready(y4)
    _check("multiblock", y4, _reference(x4, 0.1, 64.0, 8))

    print("KERNEL_OK")
</pallas_src>

<mosaic_0001>
module attributes {stable_mosaic.version = 11 : i64} {
  func.func @_fake_quant_kernel(%arg0: i32, %arg1: memref<3xf32, #tpu.memory_space<smem>>, %arg2: memref<16x128xf32, #tpu.memory_space<vmem>>, %arg3: memref<16x128xf32, #tpu.memory_space<vmem>>) attributes {dimension_semantics = [#tpu.dimension_semantics<parallel>], iteration_bounds = array<i64: 1>, scalar_prefetch = 1 : i64, scratch_operands = 0 : i64, tpu.core_type = #tpu.core_type<tc>, window_params = [{transform_indices = @transform_0, window_bounds = array<i64: 16, 128>}, {transform_indices = @transform_1, window_bounds = array<i64: 16, 128>}]} {
    %c0 = arith.constant 0 : index
    %0 = memref.load %arg1[%c0] : memref<3xf32, #tpu.memory_space<smem>>
    %c1 = arith.constant 1 : index
    %1 = memref.load %arg1[%c1] : memref<3xf32, #tpu.memory_space<smem>>
    %c2 = arith.constant 2 : index
    %2 = memref.load %arg1[%c2] : memref<3xf32, #tpu.memory_space<smem>>
    %c0_0 = arith.constant 0 : index
    %c0_1 = arith.constant 0 : index
    %3 = vector.load %arg2[%c0_0, %c0_1] : memref<16x128xf32, #tpu.memory_space<vmem>>, vector<16x128xf32>
    %4 = vector.broadcast %0 : f32 to vector<16x128xf32>
    %5 = arith.divf %3, %4 : vector<16x128xf32>
    %6 = math.roundeven %5 : vector<16x128xf32>
    %7 = vector.broadcast %1 : f32 to vector<16x128xf32>
    %8 = arith.maximumf %7, %6 : vector<16x128xf32>
    %9 = vector.broadcast %2 : f32 to vector<16x128xf32>
    %10 = arith.minimumf %9, %8 : vector<16x128xf32>
    %11 = vector.broadcast %0 : f32 to vector<16x128xf32>
    %12 = arith.mulf %10, %11 : vector<16x128xf32>
    %c0_2 = arith.constant 0 : index
    %c0_3 = arith.constant 0 : index
    %13 = vector.load %arg3[%c0_2, %c0_3] : memref<16x128xf32, #tpu.memory_space<vmem>>, vector<16x128xf32>
    tpu.vector_store %arg3[%c0_2, %c0_3], %12 {strides = array<i32>} : memref<16x128xf32, #tpu.memory_space<vmem>>, vector<16x128xf32>,
    return
  }
  func.func @transform_0(%arg0: i32, %arg1: memref<3xf32, #tpu.memory_space<smem>>) -> (i32, i32) {
    %c0_i32 = arith.constant 0 : i32
    %c0_i32_0 = arith.constant 0 : i32
    return %arg0, %c0_i32 : i32, i32
  }
  func.func @transform_1(%arg0: i32, %arg1: memref<3xf32, #tpu.memory_space<smem>>) -> (i32, i32) {
    %c0_i32 = arith.constant 0 : i32
    %c0_i32_0 = arith.constant 0 : i32
    return %arg0, %c0_i32 : i32, i32
  }
}

</mosaic_0001>

<bundles_post_ra>
// kernel: uniform_affine_quantize.1
= control target key start
LH: loop header
LB: loop body
LE: loop exit
PB: predicated region body
PF: predicated region fallthrough
CT: control target
= control target key end

     0   :  { %s106_s0 = inlined_call_operand.vmem [shape: f32[3], index: 0, kind: input, shape index: {}]   ;;  %s107_s1 = inlined_call_operand.vmem [shape: f32[16,128], index: 1, kind: input, shape index: {}]   ;;  %s108_s2 = inlined_call_operand.vmem [shape: f32[16,128], index: 2, kind: output, shape index: {}]  }
   0x1   :  { %s7_s11 = sshll.u32 %s106_s0, 4  ;;  %s8_s11 = int_to_ptr.vmem [resolvable:$true] %s7_s11 }
   0x2   :  { %s61_s12 = scalar_lea.vmem %s8_s11, 16  ;;  %p66_p1 = scmp.lt.s32.totalorder %s8_s11, %s8_s11 }
   0x3   :  { %p62_p0 = scmp.ne.s32.totalorder %s8_s11, %s61_s12  ;;  %p67_p2 = scmp.lt.s32.totalorder %s61_s12, %s61_s12 }
   0x5   :  { %p68_p3 = por %p67_p2, %p66_p1 }
   0x7   :  { %p69_p4 = pnand %p68_p3, %p62_p0 }
   0x9   :  { %72 = shalt.err (!%p69_p4)  }
   0xa   :  { %s75_s13 = smov [#allocation3]  }
   0xb   :  { %10 = dma.vmem_to_smem %s8_s11, 16, %s75_s13, [#allocation2] }
   0xc   :  { %73 = dma.done.wait [#allocation2], 16 }
   0xd   :  { %74 = vsyncadd [#allocation2], 4294967280 }
   0xe   :  { %12 = sfence }
   0xf   :  { %s15_s14 = sld [smem:[#allocation3]]  ;;  %v18_v1 = vld [vmem:[%s107_s1] sm:$0xff]  ;;  %v19_v2 = vld [vmem:[%s107_s1 + $0x8] sm:$0xff] }
  0x10   :  { %s40_s18 = sld [smem:[#allocation3 + $0x1]] }
  0x11   :  { %s41_s19 = sld [smem:[#allocation3 + $0x2]] }
  0x15   :  { %v20_v0 = vstv %s15_s14 }
  0x16   :  { %59 = vrcp.f32 %v20_v0  ;;  %v26_v17 = vstv %s40_s18 }
  0x17   :  { %v29_v20 = vstv %s41_s19 }
  0x23   :  { %v60_v3 = vpop.eup %59 }
  0x24   :  { %v22_v4 = vmul.f32 %v60_v3, %v18_v1  ;;  %v23_v5 = vmul.f32 %v60_v3, %v19_v2 }
  0x26   :  { %v44_v6 = vcvt.f32.s32 %v22_v4  ;;  %v42_v7 = vand.u32 2147483647, %v22_v4  ;;  %v52_v8 = vcvt.f32.s32 %v23_v5  ;;  %v47_v10 = vand.u32 2147483648, %v22_v4 }
  0x27   :  { %v50_v11 = vand.u32 2147483647, %v23_v5  ;;  %v55_v13 = vand.u32 2147483648, %v23_v5 }
  0x28   :  { %v45_v9 = vcvt.s32.f32 %v44_v6  ;;  %v53_v12 = vcvt.s32.f32 %v52_v8  ;;  %vm43_vm0 = vcmp.lt.f32.partialorder %v42_v7, 8388608.0 }
  0x29   :  { %vm51_vm1 = vcmp.lt.f32.partialorder %v50_v11, 8388608.0 }
  0x2a   :  { %v46_v14 = vand.u32 2147483647, %v45_v9  ;;  %v54_v15 = vand.u32 2147483647, %v53_v12 }
  0x2c   :  { %v48_v16 = vor.u32 %v47_v10, %v46_v14  ;;  %v56_v18 = vor.u32 %v55_v13, %v54_v15 }
  0x2e   :  { %v49_v19 = vsel %vm43_vm0, %v48_v16, %v22_v4  ;;  %v57_v22 = vsel %vm51_vm1, %v56_v18, %v23_v5 }
  0x2f   :  { %v27_v21 = vmax.f32 %v26_v17, %v49_v19  ;;  %v28_v23 = vmax.f32 %v26_v17, %v57_v22 }
  0x31   :  { %v30_v24 = vmin.f32 %v29_v20, %v27_v21  ;;  %v31_v25 = vmin.f32 %v29_v20, %v28_v23 }
  0x33   :  { %v32_v26 = vmul.f32 %v30_v24, %v20_v0  ;;  %v33_v27 = vmul.f32 %v31_v25, %v20_v0 }
  0x35   :  { %34 = vst [vmem:[%s108_s2] sm:$0xff] %v32_v26  ;;  %35 = vst [vmem:[%s108_s2 + $0x8] sm:$0xff] %v33_v27 }

</bundles_post_ra>
